<compile_context>
chip_gen: v7x
topology: tpu7x:2x2x1
jax: 0.10.0
libtpu: 0.0.40
codegen_flags: <defaults>
</compile_context>

<pallas_src>
from functools import partial

import jax
import jax.numpy as jnp
from jax import lax
from jax.experimental import pallas as pl
from jax.experimental.pallas import tpu as pltpu


# ---------------- Config (mirrors PyTorch `args`) ----------------
class Args:
    dim = 32
    n_heads = 2
    q_lora_rank = 0            # -> q = wq(x)
    kv_lora_rank = 16
    qk_nope_head_dim = 16
    qk_rope_head_dim = 8
    v_head_dim = 16
    max_batch_size = 2
    max_seq_len = 16
    original_seq_len = 16      # no yarn/mscale rescale
    rope_theta = 10000.0
    attn_impl = "naive"


DN = Args.qk_nope_head_dim
DR = Args.qk_rope_head_dim
DV = Args.v_head_dim
DQK = DN + DR
RLAT = Args.kv_lora_rank
SOFTMAX_SCALE = DQK ** (-0.5)
RMS_EPS = 1e-6
NEG_INF = -1e30

# MXU operand dtype (weights + activations at the dot inputs).  bf16 runs the
# MXU at full rate on v5e/v6e/v7x; accumulation stays f32.
MXU_DTYPE = jnp.bfloat16


# ---------------- Fused Pallas kernel ----------------
def _mla_kernel(
    # scalar prefetch (SMEM)
    sp_ref,
    # inputs
    x_ref, wq_ref, wkva_ref, kvnw_ref, wkvb_ref, wo_ref, cos_ref, sin_ref,
    kc_ref, vc_ref,
    # outputs
    y_ref, knew_ref, vnew_ref,
    # scratch (persist across grid steps)
    kvn_scr, kpe_scr, keys_scr, vals_scr,
    *, S, T,
):
    f32 = jnp.float32
    h = pl.program_id(1)
    sp = sp_ref[0]                                     # dynamic start_pos

    x = x_ref[0].astype(MXU_DTYPE)                     # (S, dim)
    cos = cos_ref[...]                                 # (S, DR)  cos duplicated per pair
    sin = sin_ref[...]                                 # (S, DR)  signed sin per pair

    # interleaved pair-swap (DR x DR) permutation; f32 so the swap is exact.
    # TODO(synk): replace with a pltpu.roll(+1/-1)+parity-select (XLU) once the
    #             sub-128-lane roll path is verified; the 8x8 matmul is ~free.
    rows = lax.broadcasted_iota(jnp.int32, (DR, DR), 0)
    cols = lax.broadcasted_iota(jnp.int32, (DR, DR), 1)
    pswap = (cols == rows + 1 - 2 * (rows % 2)).astype(f32)

    def rope(t):  # t: (n, DR), torch view_as_complex pairing, real arithmetic
        return t * cos + jnp.dot(t, pswap, preferred_element_type=f32) * sin

    # ---- head-invariant work: done once per batch index (h == 0), kept in scratch
    @pl.when(h == 0)
    def _():
        kv_a = jnp.dot(x, wkva_ref[...], preferred_element_type=f32)   # (S, R+DR)
        kv = kv_a[:, :RLAT]
        var = jnp.mean(kv * kv, axis=-1, keepdims=True)
        kvn_scr[...] = kv * lax.rsqrt(var + RMS_EPS) * kvnw_ref[...]   # RMSNorm, f32
        kpe_scr[...] = rope(kv_a[:, RLAT:])                            # shared k_pe

    # ---- per-head projections (MXU, bf16 in / f32 accumulate) ----------------
    q = jnp.dot(x, wq_ref[0], preferred_element_type=f32)              # (S, DQK)
    q_full = jnp.concatenate([q[:, :DN], rope(q[:, DN:])], axis=-1)    # fused q

    kvb = jnp.dot(kvn_scr[...].astype(MXU_DTYPE), wkvb_ref[0],
                  preferred_element_type=f32)                          # (S, DN+DV)
    k_new = jnp.concatenate([kvb[:, :DN], kpe_scr[...]], axis=-1)      # (S, DQK)
    v_new = kvb[:, DN:]                                                # (S, DV)

    # one contiguous new-token slab store per cache (O(S) HBM writeback)
    knew_ref[0, 0] = k_new.astype(knew_ref.dtype)
    vnew_ref[0, 0] = v_new.astype(vnew_ref.dtype)

    # ---- keys/values for attention: cached history + fresh tokens -------------
    keys_scr[...] = kc_ref[0, 0]
    vals_scr[...] = vc_ref[0, 0]
    keys_scr[pl.ds(sp, S), :] = k_new
    vals_scr[pl.ds(sp, S), :] = v_new

    # ---- attention: single fused (S,DQK)x(DQK,T) score matmul ------------------
    s = lax.dot_general(q_full.astype(MXU_DTYPE), keys_scr[...].astype(MXU_DTYPE),
                        (((1,), (1,)), ((), ())),
                        preferred_element_type=f32) * SOFTMAX_SCALE     # (S, T)
    qpos = lax.broadcasted_iota(jnp.int32, (S, T), 0) + sp
    kpos = lax.broadcasted_iota(jnp.int32, (S, T), 1)
    s = jnp.where(kpos <= qpos, s, NEG_INF)          # causal + mask slots >= end_pos
    m = jnp.max(s, axis=-1, keepdims=True)
    p = jnp.exp(s - m)
    inv = pl.reciprocal(jnp.sum(p, axis=-1, keepdims=True), approx=True)
    o = jnp.dot((p * inv).astype(MXU_DTYPE), vals_scr[...].astype(MXU_DTYPE),
                preferred_element_type=f32)                             # (S, DV)

    # ---- per-head slice of the output projection, accumulated across heads -----
    contrib = jnp.dot(o.astype(MXU_DTYPE), wo_ref[0], preferred_element_type=f32)

    @pl.when(h == 0)
    def _():
        y_ref[...] = jnp.zeros_like(y_ref)
    y_ref[0] = y_ref[0] + contrib


# ---------------- Wrapper ----------------
def _rope_tables(start_pos, S):
    """cos duplicated per pair / signed sin, matching torch view_as_complex pairing."""
    inv = 1.0 / (Args.rope_theta ** (jnp.arange(0, DR, 2, dtype=jnp.float32) / DR))
    t = start_pos.astype(jnp.float32) + jnp.arange(S, dtype=jnp.float32)
    fr = jnp.outer(t, inv)                                 # (S, DR//2)
    cos = jnp.repeat(jnp.cos(fr), 2, axis=-1)              # [c0,c0,c1,c1,...]
    sin = jnp.repeat(jnp.sin(fr), 2, axis=-1)
    sign = jnp.tile(jnp.array([-1.0, 1.0], jnp.float32), DR // 2)
    return cos, sin * sign


@partial(jax.jit, donate_argnums=(3, 4))
def mla_forward(params_t, x, start_pos, k_cache, v_cache):
    """Fused MLA forward.  Caches use (max_batch, n_heads, max_seq, head_dim) layout."""
    B, S, dim = x.shape
    H = Args.n_heads
    T = k_cache.shape[2]

    sp = jnp.asarray(start_pos, jnp.int32)
    sp_arr = sp.reshape(1)
    cos, sin = _rope_tables(sp, S)

    # index maps receive the scalar-prefetch ref as a trailing positional arg
    bmap = lambda b, h, sp: (b, 0, 0)        # per-batch blocks
    hmap = lambda b, h, sp: (h, 0, 0)        # head-major weight slabs
    bh4 = lambda b, h, sp: (b, h, 0, 0)      # per-(batch, head) cache/slab blocks
    c2 = lambda b, h, sp: (0, 0)             # shared 2-D operands

    in_specs = [
        pl.BlockSpec((1, S, dim), bmap),                 # x
        pl.BlockSpec((1, dim, DQK), hmap),               # wq_t     (H, dim, DQK)
        pl.BlockSpec((dim, RLAT + DR), c2),              # wkv_a_t
        pl.BlockSpec((1, RLAT), c2),                     # kv_norm_w
        pl.BlockSpec((1, RLAT, DN + DV), hmap),          # wkv_b_t  (H, R, DN+DV)
        pl.BlockSpec((1, DV, dim), hmap),                # wo_t     (H, DV, dim)
        pl.BlockSpec((S, DR), c2),                       # cos
        pl.BlockSpec((S, DR), c2),                       # sin
        pl.BlockSpec((1, 1, T, DQK), bh4),               # k_cache history (read only)
        pl.BlockSpec((1, 1, T, DV), bh4),                # v_cache history (read only)
    ]
    out_specs = (
        pl.BlockSpec((1, S, dim), bmap),                 # y (accumulated over heads)
        pl.BlockSpec((1, 1, S, DQK), bh4),               # new k slab
        pl.BlockSpec((1, 1, S, DV), bh4),                # new v slab
    )
    out_shape = (
        jax.ShapeDtypeStruct((B, S, dim), jnp.float32),
        jax.ShapeDtypeStruct((B, H, S, DQK), k_cache.dtype),
        jax.ShapeDtypeStruct((B, H, S, DV), v_cache.dtype),
    )
    scratch = [
        pltpu.VMEM((S, RLAT), jnp.float32),              # normalized latent kv
        pltpu.VMEM((S, DR), jnp.float32),                # rope'd k_pe (shared)
        pltpu.VMEM((T, DQK), jnp.float32),               # keys = history + new
        pltpu.VMEM((T, DV), jnp.float32),                # vals = history + new
    ]

    flops = int(2 * B * S * (H * dim * DQK + dim * (RLAT + DR)
                             + H * RLAT * (DN + DV) + H * T * DQK
                             + H * T * DV + H * DV * dim))
    cost = pl.CostEstimate(
        flops=flops,
        transcendentals=int(B * H * S * T),
        bytes_accessed=int(4 * (B * H * T * (DQK + DV) + 2 * B * S * dim)),
    )

    y, k_new, v_new = pl.pallas_call(
        partial(_mla_kernel, S=S, T=T),
        out_shape=out_shape,
        grid_spec=pltpu.PrefetchScalarGridSpec(
            num_scalar_prefetch=1,
            grid=(B, H),
            in_specs=in_specs,
            out_specs=out_specs,
            scratch_shapes=scratch,
        ),
        compiler_params=pltpu.CompilerParams(
            dimension_semantics=("parallel", "arbitrary")),
        cost_estimate=cost,
    )(sp_arr, x, params_t["wq_t"], params_t["wkv_a_t"], params_t["kv_norm_w"],
      params_t["wkv_b_t"], params_t["wo_t"], cos, sin, k_cache, v_cache)

    # O(S) in-place slab insert on the donated cache buffers (XLA aliases these).
    k_cache = lax.dynamic_update_slice(k_cache, k_new, (0, 0, sp, 0))
    v_cache = lax.dynamic_update_slice(v_cache, v_new, (0, 0, sp, 0))
    return y.astype(x.dtype), k_cache, v_cache


# ---------------- Pure-JAX reference (complex rotary, PyTorch cache layout) ----------------
def precompute_freqs_cis(dim, start_pos, end_pos, theta=Args.rope_theta):
    freqs = 1.0 / (theta ** (jnp.arange(0, dim, 2, dtype=jnp.float32) / dim))
    t = jnp.arange(start_pos, end_pos, dtype=jnp.float32)
    return jnp.exp(1j * jnp.outer(t, freqs))


def apply_rotary_emb(x, freqs_cis):
    dtype = x.dtype
    B, S, H, D = x.shape
    xr = x.astype(jnp.float32).reshape(B, S, H, D // 2, 2)
    xc = jax.lax.complex(xr[..., 0], xr[..., 1])
    fc = freqs_cis.reshape(1, S, 1, D // 2)
    y = xc * fc
    out = jnp.stack([jnp.real(y), jnp.imag(y)], axis=-1).reshape(B, S, H, D)
    return out.astype(dtype)


def mla_reference(params, x, start_pos, freqs_cis, k_cache, v_cache):
    bsz, seqlen, dim = x.shape
    end_pos = start_pos + seqlen
    H = Args.n_heads
    x2d = x.reshape(bsz * seqlen, dim)

    def lin(a, w):
        return a @ w.T

    def rms(a, w):
        var = jnp.mean(a.astype(jnp.float32) ** 2, axis=-1, keepdims=True)
        return (a * jax.lax.rsqrt(var + RMS_EPS)) * w

    q = lin(x2d, params["wq"]).reshape(bsz, seqlen, H, DQK)
    q_nope = q[..., :DN]
    q_pe = apply_rotary_emb(q[..., DN:], freqs_cis)
    kv_a = lin(x2d, params["wkv_a"]).reshape(bsz, seqlen, RLAT + DR)
    kv = kv_a[..., :RLAT]
    k_pe = apply_rotary_emb(kv_a[..., RLAT:][:, :, None, :], freqs_cis)
    kvb = lin(rms(kv.reshape(bsz * seqlen, -1), params["kv_norm_w"]),
              params["wkv_b"]).reshape(bsz, seqlen, H, DN + DV)
    k_nope = kvb[..., :DN]
    v = kvb[..., DN:]
    k = jnp.concatenate(
        [k_nope, jnp.broadcast_to(k_pe, (bsz, seqlen, H, DR))], axis=-1)
    q_full = jnp.concatenate([q_nope, q_pe], axis=-1)
    k_cache = jax.lax.dynamic_update_slice(k_cache, k, (0, start_pos, 0, 0))
    v_cache = jax.lax.dynamic_update_slice(v_cache, v, (0, start_pos, 0, 0))
    keys, vals = k_cache[:bsz, :end_pos], v_cache[:bsz, :end_pos]
    scores = jnp.einsum("bshd,bthd->bsht", q_full, keys) * SOFTMAX_SCALE
    row = jnp.arange(seqlen)[:, None]
    col = jnp.arange(end_pos)[None, :]
    mask = jnp.where(col <= row + start_pos, 0.0, -jnp.inf).astype(jnp.float32)
    scores = scores + mask[None, :, None, :]
    scores = jax.nn.softmax(scores.astype(jnp.float32), axis=-1).astype(x.dtype)
    out = jnp.einsum("bsht,bthd->bshd", scores, vals).reshape(bsz * seqlen, -1)
    y = lin(out, params["wo"]).reshape(bsz, seqlen, dim)
    return y, k_cache, v_cache


# ---------------- Main ----------------
if __name__ == "__main__":
    bsz, seqlen, start_pos = 2, 8, 0
    H = Args.n_heads

    key = jax.random.PRNGKey(0)
    k1, k2, k3, k4, kx = jax.random.split(key, 5)
    params = {
        "wq": 0.05 * jax.random.normal(k1, (H * DQK, Args.dim), jnp.float32),
        "wkv_a": 0.05 * jax.random.normal(k2, (RLAT + DR, Args.dim), jnp.float32),
        "wkv_b": 0.05 * jax.random.normal(k3, (H * (DN + DV), RLAT), jnp.float32),
        "wo": 0.05 * jax.random.normal(k4, (Args.dim, H * DV), jnp.float32),
        "kv_norm_w": jnp.ones((1, RLAT), jnp.float32),
    }
    # Weights pre-transposed ONCE, stored head-major and in bf16 (MXU operand dtype).
    params_t = {
        "wq_t": params["wq"].reshape(H, DQK, Args.dim).transpose(0, 2, 1).astype(MXU_DTYPE),
        "wkv_a_t": params["wkv_a"].T.astype(MXU_DTYPE),
        "wkv_b_t": params["wkv_b"].reshape(H, DN + DV, RLAT).transpose(0, 2, 1).astype(MXU_DTYPE),
        "wo_t": params["wo"].T.reshape(H, DV, Args.dim).astype(MXU_DTYPE),
        "kv_norm_w": params["kv_norm_w"],
    }
    x = jax.random.normal(kx, (bsz, seqlen, Args.dim), jnp.float32)

    # Kernel caches: (max_batch, n_heads, max_seq, head_dim) layout (f32; bf16 is the
    # v6e/v7x bandwidth option).
    k_cache = jnp.zeros((Args.max_batch_size, H, Args.max_seq_len, DQK), jnp.float32)
    v_cache = jnp.zeros((Args.max_batch_size, H, Args.max_seq_len, DV), jnp.float32)

    y, k_cache_new, v_cache_new = mla_forward(params_t, x, start_pos, k_cache, v_cache)
    y = jax.block_until_ready(y)

    # Reference path (f32 everywhere, complex rotary, PyTorch (B, S, H, D) cache layout).
    freqs_cis = precompute_freqs_cis(DR, start_pos, start_pos + seqlen)
    k_cache_ref0 = jnp.zeros((Args.max_batch_size, Args.max_seq_len, H, DQK), jnp.float32)
    v_cache_ref0 = jnp.zeros((Args.max_batch_size, Args.max_seq_len, H, DV), jnp.float32)
    y_ref, k_cache_ref, v_cache_ref = mla_reference(
        params, x, start_pos, freqs_cis, k_cache_ref0, v_cache_ref0)

    # Tolerances sized for bf16 MXU operands vs the f32 reference.
    assert jnp.allclose(y, y_ref, rtol=2e-2, atol=2e-2), "output mismatch vs reference"
    assert jnp.allclose(k_cache_new, jnp.transpose(k_cache_ref, (0, 2, 1, 3)),
                        rtol=2e-2, atol=2e-2), "k_cache mismatch vs reference"
    assert jnp.allclose(v_cache_new, jnp.transpose(v_cache_ref, (0, 2, 1, 3)),
                        rtol=2e-2, atol=2e-2), "v_cache mismatch vs reference"

    # TODO(synk): the 'absorb' attn_impl and quantized (fp8/int8/int4) wkv_b paths of the
    # PyTorch module are not exercised by this config and are not implemented here.
    print("KERNEL_OK")
</pallas_src>

<mosaic_0001>
module attributes {stable_mosaic.version = 11 : i64} {
  func.func @_mla_kernel(%arg0: i32, %arg1: i32, %arg2: memref<1xi32, #tpu.memory_space<smem>>, %arg3: memref<1x8x32xf32, #tpu.memory_space<vmem>>, %arg4: memref<1x32x24xbf16, #tpu.memory_space<vmem>>, %arg5: memref<32x24xbf16, #tpu.memory_space<vmem>>, %arg6: memref<1x16xf32, #tpu.memory_space<vmem>>, %arg7: memref<1x16x32xbf16, #tpu.memory_space<vmem>>, %arg8: memref<1x16x32xbf16, #tpu.memory_space<vmem>>, %arg9: memref<8x8xf32, #tpu.memory_space<vmem>>, %arg10: memref<8x8xf32, #tpu.memory_space<vmem>>, %arg11: memref<1x1x16x24xf32, #tpu.memory_space<vmem>>, %arg12: memref<1x1x16x16xf32, #tpu.memory_space<vmem>>, %arg13: memref<1x8x32xf32, #tpu.memory_space<vmem>>, %arg14: memref<1x1x8x24xf32, #tpu.memory_space<vmem>>, %arg15: memref<1x1x8x16xf32, #tpu.memory_space<vmem>>, %arg16: memref<8x16xf32, #tpu.memory_space<vmem>>, %arg17: memref<8x8xf32, #tpu.memory_space<vmem>>, %arg18: memref<16x24xf32, #tpu.memory_space<vmem>>, %arg19: memref<16x16xf32, #tpu.memory_space<vmem>>) attributes {dimension_semantics = [#tpu.dimension_semantics<parallel>, #tpu.dimension_semantics<arbitrary>], iteration_bounds = array<i64: 2, 2>, scalar_prefetch = 1 : i64, scratch_operands = 4 : i64, tpu.core_type = #tpu.core_type<tc>, window_params = [{transform_indices = @transform_0, window_bounds = array<i64: 1, 8, 32>}, {transform_indices = @transform_1, window_bounds = array<i64: 1, 32, 24>}, {pipeline_mode = #tpu.pipeline_mode<synchronous>, transform_indices = @transform_2, window_bounds = array<i64: 32, 24>}, {pipeline_mode = #tpu.pipeline_mode<synchronous>, transform_indices = @transform_3, window_bounds = array<i64: 1, 16>}, {transform_indices = @transform_4, window_bounds = array<i64: 1, 16, 32>}, {transform_indices = @transform_5, window_bounds = array<i64: 1, 16, 32>}, {pipeline_mode = #tpu.pipeline_mode<synchronous>, transform_indices = @transform_6, window_bounds = array<i64: 8, 8>}, {pipeline_mode = #tpu.pipeline_mode<synchronous>, transform_indices = @transform_7, window_bounds = array<i64: 8, 8>}, {transform_indices = @transform_8, window_bounds = array<i64: 1, 1, 16, 24>}, {transform_indices = @transform_9, window_bounds = array<i64: 1, 1, 16, 16>}, {transform_indices = @transform_10, window_bounds = array<i64: 1, 8, 32>}, {transform_indices = @transform_11, window_bounds = array<i64: 1, 1, 8, 24>}, {transform_indices = @transform_12, window_bounds = array<i64: 1, 1, 8, 16>}]} {
    %c0 = arith.constant 0 : index
    %0 = memref.load %arg2[%c0] : memref<1xi32, #tpu.memory_space<smem>>
    %c0_0 = arith.constant 0 : index
    %c0_1 = arith.constant 0 : index
    %c0_2 = arith.constant 0 : index
    %1 = vector.load %arg3[%c0_0, %c0_1, %c0_2] : memref<1x8x32xf32, #tpu.memory_space<vmem>>, vector<1x8x32xf32>
    %2 = vector.shape_cast %1 : vector<1x8x32xf32> to vector<8x32xf32>
    %3 = arith.truncf %2 : vector<8x32xf32> to vector<8x32xbf16>
    %c0_3 = arith.constant 0 : index
    %c0_4 = arith.constant 0 : index
    %4 = vector.load %arg9[%c0_3, %c0_4] : memref<8x8xf32, #tpu.memory_space<vmem>>, vector<8x8xf32>
    %c0_5 = arith.constant 0 : index
    %c0_6 = arith.constant 0 : index
    %5 = vector.load %arg10[%c0_5, %c0_6] : memref<8x8xf32, #tpu.memory_space<vmem>>, vector<8x8xf32>
    %6 = tpu.iota {dimensions = array<i32: 0>} : vector<8x8xi32>
    %7 = tpu.iota {dimensions = array<i32: 1>} : vector<8x8xi32>
    %c1_i32 = arith.constant 1 : i32
    %8 = vector.broadcast %c1_i32 : i32 to vector<8x8xi32>
    %9 = arith.addi %6, %8 : vector<8x8xi32>
    %c2_i32 = arith.constant 2 : i32
    %c0_i32 = arith.constant 0 : i32
    %10 = arith.cmpi eq, %c2_i32, %c0_i32 : i32
    %c1_i32_7 = arith.constant 1 : i32
    %11 = arith.select %10, %c1_i32_7, %c2_i32 : i32
    %12 = vector.broadcast %11 : i32 to vector<8x8xi32>
    %13 = arith.remsi %6, %12 : vector<8x8xi32>
    %c0_i32_8 = arith.constant 0 : i32
    %14 = vector.broadcast %c0_i32_8 : i32 to vector<8x8xi32>
    %15 = arith.cmpi ne, %13, %14 : vector<8x8xi32>
    %c0_i32_9 = arith.constant 0 : i32
    %16 = vector.broadcast %c0_i32_9 : i32 to vector<8x8xi32>
    %17 = arith.cmpi slt, %13, %16 : vector<8x8xi32>
    %c0_i32_10 = arith.constant 0 : i32
    %18 = arith.cmpi slt, %11, %c0_i32_10 : i32
    %19 = vector.broadcast %18 : i1 to vector<8x8xi1>
    %20 = vector.broadcast %19 : vector<8x8xi1> to vector<8x8xi1>
    %21 = arith.xori %17, %20 : vector<8x8xi1>
    %22 = arith.andi %21, %15 : vector<8x8xi1>
    %23 = vector.broadcast %11 : i32 to vector<8x8xi32>
    %24 = arith.addi %13, %23 : vector<8x8xi32>
    %25 = arith.select %22, %24, %13 : vector<8x8xi1>, vector<8x8xi32>
    %c2_i32_11 = arith.constant 2 : i32
    %26 = vector.broadcast %c2_i32_11 : i32 to vector<8x8xi32>
    %27 = arith.muli %26, %25 : vector<8x8xi32>
    %28 = arith.subi %9, %27 : vector<8x8xi32>
    %29 = arith.cmpi eq, %7, %28 : vector<8x8xi32>
    %30 = arith.extui %29 : vector<8x8xi1> to vector<8x8xi32>
    %31 = arith.sitofp %30 : vector<8x8xi32> to vector<8x8xf32>
    %c0_i32_12 = arith.constant 0 : i32
    %32 = arith.cmpi eq, %arg1, %c0_i32_12 : i32
    %33 = arith.extui %32 : i1 to i32
    %c0_i32_13 = arith.constant 0 : i32
    %34 = arith.cmpi ne, %33, %c0_i32_13 : i32
    scf.if %34 {
      %c0_70 = arith.constant 0 : index
      %c0_71 = arith.constant 0 : index
      %110 = vector.load %arg5[%c0_70, %c0_71] : memref<32x24xbf16, #tpu.memory_space<vmem>>, vector<32x24xbf16>
      %cst_72 = arith.constant dense<0.000000e+00> : vector<8x24xf32>
      %111 = tpu.matmul %3, %110, %cst_72 {dimension_numbers = #tpu.dot_dimension_numbers<[1], [0], [0], [1], [0, 0, 1, 1], [], []>} : vector<8x32xbf16>, vector<32x24xbf16>, vector<8x24xf32> -> vector<8x24xf32>
      %112 = vector.extract_strided_slice %111 {offsets = [0, 0], sizes = [8, 16], strides = [1, 1]} : vector<8x24xf32> to vector<8x16xf32>
      %113 = arith.mulf %112, %112 : vector<8x16xf32>
      %cst_73 = arith.constant dense<0.000000e+00> : vector<8xf32>
      %114 = vector.multi_reduction <add>, %113, %cst_73 [1] : vector<8x16xf32> to vector<8xf32>
      %115 = vector.shape_cast %114 : vector<8xf32> to vector<8x1xf32>
      %cst_74 = arith.constant 1.600000e+01 : f32
      %116 = vector.broadcast %cst_74 : f32 to vector<8x1xf32>
      %117 = arith.divf %115, %116 : vector<8x1xf32>
      %cst_75 = arith.constant 9.99999997E-7 : f32
      %118 = vector.broadcast %cst_75 : f32 to vector<8x1xf32>
      %119 = arith.addf %117, %118 : vector<8x1xf32>
      %120 = math.rsqrt %119 : vector<8x1xf32>
      %121 = vector.broadcast %120 : vector<8x1xf32> to vector<8x16xf32>
      %122 = arith.mulf %112, %121 : vector<8x16xf32>
      %c0_76 = arith.constant 0 : index
      %c0_77 = arith.constant 0 : index
      %123 = vector.load %arg6[%c0_76, %c0_77] : memref<1x16xf32, #tpu.memory_space<vmem>>, vector<1x16xf32>
      %124 = vector.broadcast %123 : vector<1x16xf32> to vector<8x16xf32>
      %125 = arith.mulf %122, %124 : vector<8x16xf32>
      %c0_78 = arith.constant 0 : index
      %c0_79 = arith.constant 0 : index
      %126 = vector.load %arg16[%c0_78, %c0_79] : memref<8x16xf32, #tpu.memory_space<vmem>>, vector<8x16xf32>
      tpu.vector_store %arg16[%c0_78, %c0_79], %125 {strides = array<i32>} : memref<8x16xf32, #tpu.memory_space<vmem>>, vector<8x16xf32>,
      %127 = vector.extract_strided_slice %111 {offsets = [0, 16], sizes = [8, 8], strides = [1, 1]} : vector<8x24xf32> to vector<8x8xf32>
      %128 = arith.mulf %127, %4 : vector<8x8xf32>
      %cst_80 = arith.constant dense<0.000000e+00> : vector<8x8xf32>
      %129 = tpu.matmul %127, %31, %cst_80 {dimension_numbers = #tpu.dot_dimension_numbers<[1], [0], [0], [1], [0, 0, 1, 1], [], []>} : vector<8x8xf32>, vector<8x8xf32>, vector<8x8xf32> -> vector<8x8xf32>
      %130 = arith.mulf %129, %5 : vector<8x8xf32>
      %131 = arith.addf %128, %130 : vector<8x8xf32>
      %c0_81 = arith.constant 0 : index
      %c0_82 = arith.constant 0 : index
      %132 = vector.load %arg17[%c0_81, %c0_82] : memref<8x8xf32, #tpu.memory_space<vmem>>, vector<8x8xf32>
      tpu.vector_store %arg17[%c0_81, %c0_82], %131 {strides = array<i32>} : memref<8x8xf32, #tpu.memory_space<vmem>>, vector<8x8xf32>,
    } else {
    }
    %c0_14 = arith.constant 0 : index
    %c0_15 = arith.constant 0 : index
    %c0_16 = arith.constant 0 : index
    %35 = vector.load %arg4[%c0_14, %c0_15, %c0_16] : memref<1x32x24xbf16, #tpu.memory_space<vmem>>, vector<1x32x24xbf16>
    %36 = vector.shape_cast %35 : vector<1x32x24xbf16> to vector<32x24xbf16>
    %cst = arith.constant dense<0.000000e+00> : vector<8x24xf32>
    %37 = tpu.matmul %3, %36, %cst {dimension_numbers = #tpu.dot_dimension_numbers<[1], [0], [0], [1], [0, 0, 1, 1], [], []>} : vector<8x32xbf16>, vector<32x24xbf16>, vector<8x24xf32> -> vector<8x24xf32>
    %38 = vector.extract_strided_slice %37 {offsets = [0, 0], sizes = [8, 16], strides = [1, 1]} : vector<8x24xf32> to vector<8x16xf32>
    %39 = vector.extract_strided_slice %37 {offsets = [0, 16], sizes = [8, 8], strides = [1, 1]} : vector<8x24xf32> to vector<8x8xf32>
    %40 = arith.mulf %39, %4 : vector<8x8xf32>
    %cst_17 = arith.constant dense<0.000000e+00> : vector<8x8xf32>
    %41 = tpu.matmul %39, %31, %cst_17 {dimension_numbers = #tpu.dot_dimension_numbers<[1], [0], [0], [1], [0, 0, 1, 1], [], []>} : vector<8x8xf32>, vector<8x8xf32>, vector<8x8xf32> -> vector<8x8xf32>
    %42 = arith.mulf %41, %5 : vector<8x8xf32>
    %43 = arith.addf %40, %42 : vector<8x8xf32>
    %44 = tpu.concatenate %38, %43 in 1 : vector<8x16xf32>, vector<8x8xf32> -> vector<8x24xf32>
    %c0_18 = arith.constant 0 : index
    %c0_19 = arith.constant 0 : index
    %45 = vector.load %arg16[%c0_18, %c0_19] : memref<8x16xf32, #tpu.memory_space<vmem>>, vector<8x16xf32>
    %46 = arith.truncf %45 : vector<8x16xf32> to vector<8x16xbf16>
    %c0_20 = arith.constant 0 : index
    %c0_21 = arith.constant 0 : index
    %c0_22 = arith.constant 0 : index
    %47 = vector.load %arg7[%c0_20, %c0_21, %c0_22] : memref<1x16x32xbf16, #tpu.memory_space<vmem>>, vector<1x16x32xbf16>
    %48 = vector.shape_cast %47 : vector<1x16x32xbf16> to vector<16x32xbf16>
    %cst_23 = arith.constant dense<0.000000e+00> : vector<8x32xf32>
    %49 = tpu.matmul %46, %48, %cst_23 {dimension_numbers = #tpu.dot_dimension_numbers<[1], [0], [0], [1], [0, 0, 1, 1], [], []>} : vector<8x16xbf16>, vector<16x32xbf16>, vector<8x32xf32> -> vector<8x32xf32>
    %50 = vector.extract_strided_slice %49 {offsets = [0, 0], sizes = [8, 16], strides = [1, 1]} : vector<8x32xf32> to vector<8x16xf32>
    %c0_24 = arith.constant 0 : index
    %c0_25 = arith.constant 0 : index
    %51 = vector.load %arg17[%c0_24, %c0_25] : memref<8x8xf32, #tpu.memory_space<vmem>>, vector<8x8xf32>
    %52 = tpu.concatenate %50, %51 in 1 : vector<8x16xf32>, vector<8x8xf32> -> vector<8x24xf32>
    %53 = vector.extract_strided_slice %49 {offsets = [0, 16], sizes = [8, 16], strides = [1, 1]} : vector<8x32xf32> to vector<8x16xf32>
    %c0_26 = arith.constant 0 : index
    %c0_27 = arith.constant 0 : index
    %c0_28 = arith.constant 0 : index
    %c0_29 = arith.constant 0 : index
    %54 = vector.load %arg14[%c0_26, %c0_27, %c0_28, %c0_29] : memref<1x1x8x24xf32, #tpu.memory_space<vmem>>, vector<1x1x8x24xf32>
    %55 = vector.shape_cast %54 : vector<1x1x8x24xf32> to vector<8x24xf32>
    %56 = vector.shape_cast %52 : vector<8x24xf32> to vector<1x1x8x24xf32>
    tpu.vector_store %arg14[%c0_26, %c0_27, %c0_28, %c0_29], %56 {strides = array<i32>} : memref<1x1x8x24xf32, #tpu.memory_space<vmem>>, vector<1x1x8x24xf32>,
    %c0_30 = arith.constant 0 : index
    %c0_31 = arith.constant 0 : index
    %c0_32 = arith.constant 0 : index
    %c0_33 = arith.constant 0 : index
    %57 = vector.load %arg15[%c0_30, %c0_31, %c0_32, %c0_33] : memref<1x1x8x16xf32, #tpu.memory_space<vmem>>, vector<1x1x8x16xf32>
    %58 = vector.shape_cast %57 : vector<1x1x8x16xf32> to vector<8x16xf32>
    %59 = vector.shape_cast %53 : vector<8x16xf32> to vector<1x1x8x16xf32>
    tpu.vector_store %arg15[%c0_30, %c0_31, %c0_32, %c0_33], %59 {strides = array<i32>} : memref<1x1x8x16xf32, #tpu.memory_space<vmem>>, vector<1x1x8x16xf32>,
    %c0_34 = arith.constant 0 : index
    %c0_35 = arith.constant 0 : index
    %c0_36 = arith.constant 0 : index
    %c0_37 = arith.constant 0 : index
    %60 = vector.load %arg11[%c0_34, %c0_35, %c0_36, %c0_37] : memref<1x1x16x24xf32, #tpu.memory_space<vmem>>, vector<1x1x16x24xf32>
    %61 = vector.shape_cast %60 : vector<1x1x16x24xf32> to vector<16x24xf32>
    %c0_38 = arith.constant 0 : index
    %c0_39 = arith.constant 0 : index
    %62 = vector.load %arg18[%c0_38, %c0_39] : memref<16x24xf32, #tpu.memory_space<vmem>>, vector<16x24xf32>
    tpu.vector_store %arg18[%c0_38, %c0_39], %61 {strides = array<i32>} : memref<16x24xf32, #tpu.memory_space<vmem>>, vector<16x24xf32>,
    %c0_40 = arith.constant 0 : index
    %c0_41 = arith.constant 0 : index
    %c0_42 = arith.constant 0 : index
    %c0_43 = arith.constant 0 : index
    %63 = vector.load %arg12[%c0_40, %c0_41, %c0_42, %c0_43] : memref<1x1x16x16xf32, #tpu.memory_space<vmem>>, vector<1x1x16x16xf32>
    %64 = vector.shape_cast %63 : vector<1x1x16x16xf32> to vector<16x16xf32>
    %c0_44 = arith.constant 0 : index
    %c0_45 = arith.constant 0 : index
    %65 = vector.load %arg19[%c0_44, %c0_45] : memref<16x16xf32, #tpu.memory_space<vmem>>, vector<16x16xf32>
    tpu.vector_store %arg19[%c0_44, %c0_45], %64 {strides = array<i32>} : memref<16x16xf32, #tpu.memory_space<vmem>>, vector<16x16xf32>,
    %66 = arith.index_cast %0 : i32 to index
    %c0_46 = arith.constant 0 : index
    %67 = vector.load %arg18[%66, %c0_46] : memref<16x24xf32, #tpu.memory_space<vmem>>, vector<8x24xf32>
    tpu.vector_store %arg18[%66, %c0_46], %52 {strides = array<i32>} : memref<16x24xf32, #tpu.memory_space<vmem>>, vector<8x24xf32>,
    %68 = arith.index_cast %0 : i32 to index
    %c0_47 = arith.constant 0 : index
    %69 = vector.load %arg19[%68, %c0_47] : memref<16x16xf32, #tpu.memory_space<vmem>>, vector<8x16xf32>
    tpu.vector_store %arg19[%68, %c0_47], %53 {strides = array<i32>} : memref<16x16xf32, #tpu.memory_space<vmem>>, vector<8x16xf32>,
    %70 = arith.truncf %44 : vector<8x24xf32> to vector<8x24xbf16>
    %c0_48 = arith.constant 0 : index
    %c0_49 = arith.constant 0 : index
    %71 = vector.load %arg18[%c0_48, %c0_49] : memref<16x24xf32, #tpu.memory_space<vmem>>, vector<16x24xf32>
    %72 = arith.truncf %71 : vector<16x24xf32> to vector<16x24xbf16>
    %cst_50 = arith.constant dense<0.000000e+00> : vector<8x16xf32>
    %73 = tpu.matmul %70, %72, %cst_50 {dimension_numbers = #tpu.dot_dimension_numbers<[1], [1], [0], [0], [0, 0, 1, 0], [], []>} : vector<8x24xbf16>, vector<16x24xbf16>, vector<8x16xf32> -> vector<8x16xf32>
    %cst_51 = arith.constant 0.204124153 : f32
    %74 = vector.broadcast %cst_51 : f32 to vector<8x16xf32>
    %75 = arith.mulf %73, %74 : vector<8x16xf32>
    %76 = tpu.iota {dimensions = array<i32: 0>} : vector<8x16xi32>
    %77 = vector.broadcast %0 : i32 to vector<8x16xi32>
    %78 = arith.addi %76, %77 : vector<8x16xi32>
    %79 = tpu.iota {dimensions = array<i32: 1>} : vector<8x16xi32>
    %80 = arith.cmpi sle, %79, %78 : vector<8x16xi32>
    %cst_52 = arith.constant -1.000000e+30 : f32
    %81 = vector.broadcast %cst_52 : f32 to vector<8x16xf32>
    %82 = arith.select %80, %75, %81 : vector<8x16xi1>, vector<8x16xf32>
    %cst_53 = arith.constant dense<0xFF800000> : vector<8xf32>
    %83 = vector.multi_reduction <maximumf>, %82, %cst_53 [1] : vector<8x16xf32> to vector<8xf32>
    %84 = vector.shape_cast %83 : vector<8xf32> to vector<8x1xf32>
    %85 = vector.broadcast %84 : vector<8x1xf32> to vector<8x16xf32>
    %86 = arith.subf %82, %85 : vector<8x16xf32>
    %87 = math.exp %86 : vector<8x16xf32>
    %cst_54 = arith.constant dense<0.000000e+00> : vector<8xf32>
    %88 = vector.multi_reduction <add>, %87, %cst_54 [1] : vector<8x16xf32> to vector<8xf32>
    %89 = vector.shape_cast %88 : vector<8xf32> to vector<8x1xf32>
    %90 = tpu.reciprocal %89 {approx = true} : vector<8x1xf32> -> vector<8x1xf32>
    %91 = vector.broadcast %90 : vector<8x1xf32> to vector<8x16xf32>
    %92 = arith.mulf %87, %91 : vector<8x16xf32>
    %93 = arith.truncf %92 : vector<8x16xf32> to vector<8x16xbf16>
    %c0_55 = arith.constant 0 : index
    %c0_56 = arith.constant 0 : index
    %94 = vector.load %arg19[%c0_55, %c0_56] : memref<16x16xf32, #tpu.memory_space<vmem>>, vector<16x16xf32>
    %95 = arith.truncf %94 : vector<16x16xf32> to vector<16x16xbf16>
    %cst_57 = arith.constant dense<0.000000e+00> : vector<8x16xf32>
    %96 = tpu.matmul %93, %95, %cst_57 {dimension_numbers = #tpu.dot_dimension_numbers<[1], [0], [0], [1], [0, 0, 1, 1], [], []>} : vector<8x16xbf16>, vector<16x16xbf16>, vector<8x16xf32> -> vector<8x16xf32>
    %97 = arith.truncf %96 : vector<8x16xf32> to vector<8x16xbf16>
    %c0_58 = arith.constant 0 : index
    %c0_59 = arith.constant 0 : index
    %c0_60 = arith.constant 0 : index
    %98 = vector.load %arg8[%c0_58, %c0_59, %c0_60] : memref<1x16x32xbf16, #tpu.memory_space<vmem>>, vector<1x16x32xbf16>
    %99 = vector.shape_cast %98 : vector<1x16x32xbf16> to vector<16x32xbf16>
    %cst_61 = arith.constant dense<0.000000e+00> : vector<8x32xf32>
    %100 = tpu.matmul %97, %99, %cst_61 {dimension_numbers = #tpu.dot_dimension_numbers<[1], [0], [0], [1], [0, 0, 1, 1], [], []>} : vector<8x16xbf16>, vector<16x32xbf16>, vector<8x32xf32> -> vector<8x32xf32>
    %c0_i32_62 = arith.constant 0 : i32
    %101 = arith.cmpi eq, %arg1, %c0_i32_62 : i32
    %102 = arith.extui %101 : i1 to i32
    %c0_i32_63 = arith.constant 0 : i32
    %103 = arith.cmpi ne, %102, %c0_i32_63 : i32
    scf.if %103 {
      %cst_70 = arith.constant 0.000000e+00 : f32
      %110 = vector.broadcast %cst_70 : f32 to vector<1x8x32xf32>
      %c0_71 = arith.constant 0 : index
      %c0_72 = arith.constant 0 : index
      %c0_73 = arith.constant 0 : index
      %111 = vector.load %arg13[%c0_71, %c0_72, %c0_73] : memref<1x8x32xf32, #tpu.memory_space<vmem>>, vector<1x8x32xf32>
      tpu.vector_store %arg13[%c0_71, %c0_72, %c0_73], %110 {strides = array<i32>} : memref<1x8x32xf32, #tpu.memory_space<vmem>>, vector<1x8x32xf32>,
    } else {
    }
    %c0_64 = arith.constant 0 : index
    %c0_65 = arith.constant 0 : index
    %c0_66 = arith.constant 0 : index
    %104 = vector.load %arg13[%c0_64, %c0_65, %c0_66] : memref<1x8x32xf32, #tpu.memory_space<vmem>>, vector<1x8x32xf32>
    %105 = vector.shape_cast %104 : vector<1x8x32xf32> to vector<8x32xf32>
    %106 = arith.addf %105, %100 : vector<8x32xf32>
    %c0_67 = arith.constant 0 : index
    %c0_68 = arith.constant 0 : index
    %c0_69 = arith.constant 0 : index
    %107 = vector.load %arg13[%c0_67, %c0_68, %c0_69] : memref<1x8x32xf32, #tpu.memory_space<vmem>>, vector<1x8x32xf32>
    %108 = vector.shape_cast %107 : vector<1x8x32xf32> to vector<8x32xf32>
    %109 = vector.shape_cast %106 : vector<8x32xf32> to vector<1x8x32xf32>
    tpu.vector_store %arg13[%c0_67, %c0_68, %c0_69], %109 {strides = array<i32>} : memref<1x8x32xf32, #tpu.memory_space<vmem>>, vector<1x8x32xf32>,
    return
  }
  func.func @transform_0(%arg0: i32, %arg1: i32, %arg2: memref<1xi32, #tpu.memory_space<smem>>) -> (i32, i32, i32) {
    %c0_i32 = arith.constant 0 : i32
    %c0_i32_0 = arith.constant 0 : i32
    %c0_i32_1 = arith.constant 0 : i32
    return %arg0, %c0_i32, %c0_i32_0 : i32, i32, i32
  }
  func.func @transform_1(%arg0: i32, %arg1: i32, %arg2: memref<1xi32, #tpu.memory_space<smem>>) -> (i32, i32, i32) {
    %c0_i32 = arith.constant 0 : i32
    %c0_i32_0 = arith.constant 0 : i32
    %c0_i32_1 = arith.constant 0 : i32
    return %arg1, %c0_i32, %c0_i32_0 : i32, i32, i32
  }
  func.func @transform_2(%arg0: i32, %arg1: i32, %arg2: memref<1xi32, #tpu.memory_space<smem>>) -> (i32, i32) {
    %c0_i32 = arith.constant 0 : i32
    %c0_i32_0 = arith.constant 0 : i32
    %c0_i32_1 = arith.constant 0 : i32
    return %c0_i32, %c0_i32_0 : i32, i32
  }
  func.func @transform_3(%arg0: i32, %arg1: i32, %arg2: memref<1xi32, #tpu.memory_space<smem>>) -> (i32, i32) {
    %c0_i32 = arith.constant 0 : i32
    %c0_i32_0 = arith.constant 0 : i32
    %c0_i32_1 = arith.constant 0 : i32
    return %c0_i32, %c0_i32_0 : i32, i32
  }
  func.func @transform_4(%arg0: i32, %arg1: i32, %arg2: memref<1xi32, #tpu.memory_space<smem>>) -> (i32, i32, i32) {
    %c0_i32 = arith.constant 0 : i32
    %c0_i32_0 = arith.constant 0 : i32
    %c0_i32_1 = arith.constant 0 : i32
    return %arg1, %c0_i32, %c0_i32_0 : i32, i32, i32
  }
  func.func @transform_5(%arg0: i32, %arg1: i32, %arg2: memref<1xi32, #tpu.memory_space<smem>>) -> (i32, i32, i32) {
    %c0_i32 = arith.constant 0 : i32
    %c0_i32_0 = arith.constant 0 : i32
    %c0_i32_1 = arith.constant 0 : i32
    return %arg1, %c0_i32, %c0_i32_0 : i32, i32, i32
  }
  func.func @transform_6(%arg0: i32, %arg1: i32, %arg2: memref<1xi32, #tpu.memory_space<smem>>) -> (i32, i32) {
    %c0_i32 = arith.constant 0 : i32
    %c0_i32_0 = arith.constant 0 : i32
    %c0_i32_1 = arith.constant 0 : i32
    return %c0_i32, %c0_i32_0 : i32, i32
  }
  func.func @transform_7(%arg0: i32, %arg1: i32, %arg2: memref<1xi32, #tpu.memory_space<smem>>) -> (i32, i32) {
    %c0_i32 = arith.constant 0 : i32
    %c0_i32_0 = arith.constant 0 : i32
    %c0_i32_1 = arith.constant 0 : i32
    return %c0_i32, %c0_i32_0 : i32, i32
  }
  func.func @transform_8(%arg0: i32, %arg1: i32, %arg2: memref<1xi32, #tpu.memory_space<smem>>) -> (i32, i32, i32, i32) {
    %c0_i32 = arith.constant 0 : i32
    %c0_i32_0 = arith.constant 0 : i32
    %c0_i32_1 = arith.constant 0 : i32
    return %arg0, %arg1, %c0_i32, %c0_i32_0 : i32, i32, i32, i32
  }
  func.func @transform_9(%arg0: i32, %arg1: i32, %arg2: memref<1xi32, #tpu.memory_space<smem>>) -> (i32, i32, i32, i32) {
    %c0_i32 = arith.constant 0 : i32
    %c0_i32_0 = arith.constant 0 : i32
    %c0_i32_1 = arith.constant 0 : i32
    return %arg0, %arg1, %c0_i32, %c0_i32_0 : i32, i32, i32, i32
  }
  func.func @transform_10(%arg0: i32, %arg1: i32, %arg2: memref<1xi32, #tpu.memory_space<smem>>) -> (i32, i32, i32) {
    %c0_i32 = arith.constant 0 : i32
    %c0_i32_0 = arith.constant 0 : i32
    %c0_i32_1 = arith.constant 0 : i32
    return %arg0, %c0_i32, %c0_i32_0 : i32, i32, i32
  }
  func.func @transform_11(%arg0: i32, %arg1: i32, %arg2: memref<1xi32, #tpu.memory_space<smem>>) -> (i32, i32, i32, i32) {
    %c0_i32 = arith.constant 0 : i32
    %c0_i32_0 = arith.constant 0 : i32
    %c0_i32_1 = arith.constant 0 : i32
    return %arg0, %arg1, %c0_i32, %c0_i32_0 : i32, i32, i32, i32
  }
  func.func @transform_12(%arg0: i32, %arg1: i32, %arg2: memref<1xi32, #tpu.memory_space<smem>>) -> (i32, i32, i32, i32) {
    %c0_i32 = arith.constant 0 : i32
    %c0_i32_0 = arith.constant 0 : i32
    %c0_i32_1 = arith.constant 0 : i32
    return %arg0, %arg1, %c0_i32, %c0_i32_0 : i32, i32, i32, i32
  }
}

</mosaic_0001>

<bundles_post_ra>
// kernel: tile.6
= control target key start
LH: loop header
LB: loop body
LE: loop exit
PB: predicated region body
PF: predicated region fallthrough
CT: control target
= control target key end

     0   :  { %s22_s0 = inlined_call_operand.vmem [shape: f32[2], index: 0, kind: input, shape index: {}]   ;;  %s23_s1 = inlined_call_operand.vmem [shape: f32[4,2], index: 1, kind: output, shape index: {}]  }
   0x1   :  { %v4_v0 = vld [vmem:[%s22_s0] ss:$0 sm:$0xff] }
   0x2   :  { %5 = vst [vmem:[%s23_s1] sm:$0xf] %v4_v0 }

// kernel: mul.21
= control target key start
LH: loop header
LB: loop body
LE: loop exit
PB: predicated region body
PF: predicated region fallthrough
CT: control target
= control target key end

     0   :  { %vm7_vm0 = vcmask 15360   ;;  %s37_s8 = smov 2   ;;  %s38_s9 = smov 4   ;;  %vm13_vm1 = vcmask 64560   ;;  %vm19_vm2 = vcmask 48160   ;;  %vm25_vm3 = vcmask 31760   ;;  %s55_s0 = inlined_call_operand.vmem [shape: f32[4,2], index: 0, kind: input, shape index: {}]   ;;  %s56_s1 = inlined_call_operand.vmem [shape: f32[8], index: 1, kind: output, shape index: {}]  }
   0x1   :  { %v4_v0 = vld [vmem:[%s55_s0] sm:$0xf]  ;;  %s36_s0 = smov 6  }
   0x2   :  { %5 = vst [vmem:[#allocation1] sm:$0xf] %v4_v0 }
   0x9   :  { %v10_v1 = vld [vmem:[#allocation1 + $0x3] sm:$0x1]   ;;  %v22_v2 = vld [vmem:[#allocation1 + $0x1] sm:$0x1]   ;;  %v6_v3 = vld [vmem:[#allocation1] sm:$0x1]  }
   0xa   :  { %11 = vrot.lane.b32.xlu0 %v10_v1, %s36_s0  ;;  %23 = vrot.lane.b32.xlu1 %v22_v2, %s37_s8  ;;  %v16_v4 = vld [vmem:[#allocation1 + $0x2] sm:$0x1]   ;;  %8 = vst.msk [vmem:[#allocation0] sm:$0x1] %vm7_vm0, %v6_v3  }
   0xe   :  { %17 = vrot.lane.b32.xlu0 %v16_v4, %s38_s9 }
  0x7c   :  { %v12_v5 = vpop.permute.xlu0 %11   ;;  %v24_v6 = vpop.permute.xlu1 %23  }
  0x7d   :  { %14 = vst.msk [vmem:[#allocation0] sm:$0x1] %vm13_vm1, %v12_v5  }
  0x80   :  { %v18_v7 = vpop.permute.xlu0 %17  }
  0x81   :  { %20 = vst.msk [vmem:[#allocation0] sm:$0x1] %vm19_vm2, %v18_v7  }
  0x82   :  { %26 = vst.msk [vmem:[#allocation0] sm:$0x1] %vm25_vm3, %v24_v6  }
  0x89   :  { %v30_v8 = vld [vmem:[#allocation0] sm:$0x1] }
  0x8a   :  { %32 = vst [vmem:[%s56_s1] sm:$0x1] %v30_v8 }

// kernel: mla_forward.1
= control target key start
LH: loop header
LB: loop body
LE: loop exit
PB: predicated region body
PF: predicated region fallthrough
CT: control target
= control target key end

     0   :  { %s2139_s0 = inlined_call_operand.<no memory space> [shape: s32[1], index: 0, kind: input, shape index: {}]   ;;  %s2140_s1 = inlined_call_operand.vmem [shape: f32[2,8,32], index: 1, kind: input, shape index: {}]   ;;  %s2141_s2 = inlined_call_operand.vmem [shape: bf16[2,32,24], index: 2, kind: input, shape index: {}]   ;;  %s2142_s3 = inlined_call_operand.vmem [shape: bf16[32,24], index: 3, kind: input, shape index: {}]   ;;  %s2143_s4 = inlined_call_operand.vmem [shape: f32[1,16], index: 4, kind: input, shape index: {}]   ;;  %s2144_s5 = inlined_call_operand.vmem [shape: bf16[2,16,32], index: 5, kind: input, shape index: {}]   ;;  %s2145_s6 = inlined_call_operand.vmem [shape: bf16[2,16,32], index: 6, kind: input, shape index: {}]   ;;  %s2146_s7 = inlined_call_operand.vmem [shape: f32[8,8], index: 7, kind: input, shape index: {}]   ;;  %s2147_s8 = inlined_call_operand.vmem [shape: f32[8,8], index: 8, kind: input, shape index: {}]   ;;  %s2148_s9 = inlined_call_operand.vmem [shape: f32[2,2,16,24], index: 9, kind: input, shape index: {}]   ;;  %s2149_s10 = inlined_call_operand.vmem [shape: f32[2,2,16,16], index: 10, kind: input, shape index: {}]   ;;  %s2150_s11 = inlined_call_operand.hbm [shape: f32[2,8,32], index: 11, kind: output, shape index: {0}]   ;;  %s2151_s12 = inlined_call_operand.vmem [shape: f32[2,2,8,24], index: 12, kind: output, shape index: {1}]   ;;  %s2152_s13 = inlined_call_operand.vmem [shape: f32[2,2,8,16], index: 13, kind: output, shape index: {2}]  }
   0x1   :  { %2165 = sst [smem:[#allocation21_spill]] %s2140_s1 }
   0x2   :  { %2166 = sst [smem:[#allocation22_spill]] %s2141_s2 }
   0x3   :  { %2167 = sst [smem:[#allocation23_spill]] %s2146_s7 }
   0x4   :  { %2168 = sst [smem:[#allocation24_spill]] %s2147_s8 }
   0x5   :  { %2169 = sst [smem:[#allocation25_spill]] %s2150_s11 }
   0x6   :  { %19 = sst [smem:[#allocation7]] %s2139_s0 }
   0x7   :  { %20 = vsyncpa [#allocation9], 0 }
   0x8   :  { %22 = vsyncpa [#allocation9 + $0x1], 0  ;;  %s1845_s27 = smov 0   ;;  %s1847_s28 = smov 0  }
   0x9   :  { %s1849_s29 = smov 0   ;;  %s1851_s30 = smov 0  }
   0xa   :  { %s1853_s14 = smov 0   ;;  %s1855_s15 = smov 0  }
   0xb   :  { %s1857_s16 = smov 0   ;;  %s1859_s17 = smov 0  }
   0xc LB: > { %2170 = sst [smem:[#allocation11_spill]] %s1730_s27  ;;  %s1452_s0 = sadd.s32 4294967295, %s1758_s17   ;;  %s1758_s17 = sphi %s1859_s17, %s28_s17   ;;  %s1754_s16 = sphi %s1857_s16, %s2199_s16   ;;  %s1750_s15 = sphi %s1855_s15, %s2202_s15   ;;  %s1746_s14 = sphi %s1853_s14, %s2197_s14   ;;  %s1742_s30 = sphi %s1851_s30, %s2196_s30   ;;  %s1738_s29 = sphi %s1849_s29, %s2195_s29   ;;  %s1734_s28 = sphi %s1847_s28, %s2201_s28   ;;  %s1730_s27 = sphi %s1845_s27, %s2200_s27  }
   0xd   : > { %2171 = sst [smem:[#allocation12_spill]] %s1738_s29  ;;  %s1453_s18 = sadd.s32 4294967294, %s1758_s17  }
   0xe   : > { %2172 = sst [smem:[#allocation13_spill]] %s1750_s15  ;;  %s37_s19 = sadd.s32 1, %s1750_s15 }
   0xf   : > { %2173 = sst [smem:[#allocation14_spill]] %s1754_s16  ;;  %p38_p0 = scmp.ge.s32.totalorder %s37_s19, 2 }
  0x10   : > { %2174 = sst [smem:[#allocation15_spill]] %s1758_s17  ;;  %s40_s20 = sadd.s32 1, %s1754_s16 }
  0x11   : > { %p301_p1 = scmp.ne.s32.totalorder %s1738_s29, %s1734_s28  ;;  %p302_p2 = scmp.eq.s32.totalorder %s1452_s0, 3 }
  0x12   : > { %s2204_s19 = smov (%p38_p0, %s37_s19), 0  ;;  %s2206_s20 = smov (!%p38_p0, %s40_s20), %s1754_s16 }
  0x13   : > { %2175 = sst [smem:[#allocation16_spill]] %s2204_s19  ;;  %p1894_p3 = por %p302_p2, %p301_p1 }
  0x14   : > { %p307_p4 = scmp.ne.s32.totalorder %s1734_s28, %s1730_s27  ;;  %p42_p5 = scmp.ge.s32.totalorder %s2206_s20, 2 }
  0x15   : > { %s2176_s21 = scalar_select %p1894_p3, 1, 0 }
  0x16   : > { %p308_p6 = scmp.eq.s32.totalorder %s1453_s18, 3  ;;  %p1456_p7 = scmp.ge.s32.totalorder %s1758_s17, 1 }
  0x17   : > { %2177 = sst [smem:[#allocation17_spill]] %s2176_s21  ;;  %p449_p8 = scmp.lt.s32.totalorder %s1758_s17, 5 }
  0x18   : > { %s2208_s20 = smov (%p42_p5, %s2206_s20), 0  ;;  %p1904_p9 = por %p308_p6, %p307_p4 }
  0x19   : > { %2178 = sst [smem:[#allocation18_spill]] %s2208_s20  ;;  %p450_p10 = pnand %p1456_p7, %p449_p8 }
  0x1a   : > { %s2179_s22 = scalar_select %p1904_p9, 1, 0 }
  0x1b   : > { %s288_s23 = ssub.s32 %s1754_s16, %s2208_s20  ;;  %s291_s24 = sadd.s32 1, %s1738_s29  ;;  %v598_v2 = vlaneseq (!%p450_p10) }
  0x1c   : > { %2180 = sst [smem:[#allocation19_spill]] %s2179_s22  ;;  %p289_p11 = scmp.eq.s32.totalorder %s288_s23, 0 }
  0x1d   : > { %453 = sbr.rel (%p450_p10) target bundleno = 2477 (0x9ad), region = 60  ;;  %s2156_s26 = sand.u32 (!%p450_p10), 1, %s1734_s28   ;;  %v1933_v3 = vshrl.u32 (!%p450_p10), %v598_v2, 7  ;;  %v1942_v6 = vand.u32 (!%p450_p10), 127, %v598_v2 }
  0x1e   : > { %s1912_s25 = scalar_select %p289_p11, %s1738_s29, %s291_s24  }
  0x1f   : > { %p539_p12 = scmp.lt.s32.totalorder (!%p450_p10), %s1746_s14, 1  ;;  %s2182_s7 = sld [smem:[#allocation23_spill]] (!%p450_p10)  ;;  %v602_v4 = vadd.s32 (!%p450_p10), 1, %v1933_v3  ;;  %v607_v5 = vand.u32 (!%p450_p10), 1, %v1933_v3 }
  0x20   : > { %2181 = sst [smem:[#allocation20_spill]] %s1912_s25  ;;  %s2183_s8 = sld [smem:[#allocation24_spill]] (!%p450_p10) }
  0x21   : > { %s1928_s23 = sshll.u32 (!%p450_p10), %s2156_s26, 3  ;;  %p543_p13 = scmp.lt.s32.totalorder (!%p450_p10), %s1742_s30, 1  ;;  %v615_v7 = vmul.u32 (!%p450_p10), 2, %v607_v5 }
  0x22   : > { %s1931_s24 = sld [smem:[#allocation7]] (!%p450_p10)  ;;  %s2185_s2 = sld [smem:[#allocation22_spill]] (!%p450_p10) }
  0x23   : > { %s2184_s1 = sld [smem:[#allocation21_spill]] (!%p450_p10)  ;;  %v616_v10 = vsub.s32 (!%p450_p10), %v602_v4, %v615_v7  ;;  %p1476_p0 = scmp.ne.s32.totalorder (!%p450_p10), %s1742_s30, 0 }
  0x24   : > { %s540_s16 = scalar_select %p539_p12, %s1746_s14, 1 }
  0x25   : > { %v1919_v0 = vld [vmem:[%s2182_s7] sm:$0xff]  ;;  %s544_s15 = scalar_select %p543_p13, %s1742_s30, 1  ;;  %vm1962_vm0 = vcmp.eq.s32.totalorder %v1942_v6, %v616_v10 }
  0x26   : > { %v1924_v1 = vld [vmem:[%s2183_s8] sm:$0xff]  ;;  %s1458_s0 = sshll.u32 %s540_s16, 3  ;;  %s1466_s18 = sshll.u32 %s540_s16, 2  ;;  %v1760_v13 = vmov (!%p1476_p0), 0.0   ;;  %v1653_v14 = vld [vmem:[%s2142_s3 + $0x8] sm:$0xff] (!%p1476_p0)   ;;  %vm1761_vm1 = vmmov (!%p1476_p0), 0  }
  0x27   : > { %s1499_s8 = sshll.u32 %s544_s15, 4  ;;  %s1500_s22 = sshll.u32 %s544_s15, 3  ;;  %v1652_v12 = vld [vmem:[%s2142_s3] sm:$0xff] (!%p1476_p0)   ;;  %1520 = vmatprep.subr.bf16.mxu0 (!%p1476_p0), %v1760_v13  ;;  %1528 = vmatprep.subr.mxu1 (!%p1476_p0), %v1760_v13  ;;  %vm640_vm2 = vcmask (!%p1476_p0), 261120   ;;  %v1762_v15 = vmov (!%p1476_p0), 1.0   ;;  %vm711_vm3 = vcmask (!%p1476_p0), 64512  }
  0x28   : > { %s1947_s29 = scalar_lea.vmem %s2185_s2, %s1499_s8  ;;  %s1952_s11 = scalar_lea.vmem %s2144_s5, %s1500_s22  ;;  %1521 = vmatpush3.bf16.msra.mxu0 (!%p1476_p0), %v1652_v12  ;;  %1524 = vmatprep.mubr.msk.bf16.mxu0 (!%p1476_p0), %vm1761_vm1, %v1760_v13  ;;  %vm685_vm4 = vcmask (!%p1476_p0), 130048   ;;  %v1480_v34 = vld [vmem:[%s2143_s4] ss:$0 sm:$0xff] (!%p1476_p0) }
  0x29   : > { %s542_s7 = scalar_lea.vmem %s2184_s1, %s1458_s0  ;;  %s1957_s0 = scalar_lea.vmem %s2145_s6, %s1500_s22  ;;  %1522 = vmatprep.subr.bf16.mxu0 (!%p1476_p0), %v1760_v13  ;;  %1530 = vmatprep.mubr.msk.f32.mxu1 (!%p1476_p0), %vm1761_vm1, %v1760_v13 }
  0x2a   : > { %v594_v8 = vld [vmem:[%s542_s7] sm:$0xff]  ;;  %s1465_s20 = sshll.u32 %s544_s15, 1  ;;  %s1471_s25 = sshll.u32 %s540_s16, 1  ;;  %1529 = vmatpush3.msk.msra.mxu1 (!%p1476_p0), %vm1962_vm0, %v1762_v15 }
  0x2b   : > { %v1959_v9 = vpack.c.bf16 %v594_v8, %v594_v8  ;;  %s564_s8 = sadd.s32 %s1466_s18, %s1465_s20  ;;  %s581_s26 = sadd.s32 %s1471_s25, %s544_s15 }
  0x2c   : > { %s1467_s7 = sshll.u32 %s564_s8, 3  ;;  %s1472_s27 = sshll.u32 %s581_s26, 3  ;;  %1523 = vmatpush3.bf16.msra.mxu0 (!%p1476_p0), %v1653_v14 }
  0x2d   : > { %s1969_s21 = scalar_lea.vmem %s2148_s9, %s1467_s7  ;;  %s1974_s2 = scalar_lea.vmem %s2149_s10, %s1467_s7 }
  0x2e   : > { %s1979_s15 = scalar_lea.vmem %s2151_s12, %s1472_s27  ;;  %s1984_s8 = scalar_lea.vmem %s2152_s13, %s1472_s27 }
  0x2f   : > { %s1987_s26 = scalar_lea.vmem [#allocation8], %s1928_s23  ;;  %623 = sbr.rel (%p1476_p0) target bundleno = 821 (0x335), region = 64  ;;  %1525 = vmatmul.mubr.msk.bf16.vlgmr.msra.gmra.mrb[0].mxu0 (!%p1476_p0), %vm640_vm2, %v1959_v9 }
  0x30   : > { %s1763_s23 = smov (!%p1476_p0), 112   ;;  %s1764_s27 = smov (!%p1476_p0), 16  }
 0x102   : > { %v678_v16 = vpop.f32.mrb[0].mxu0 }
 0x103   : > { %709 = vrot.lane.b32.xlu0 %v678_v16, %s1763_s23  ;;  %v1526_v17 = vpop.f32.mrb[1].mxu0  ;;  %v684_v24 = vmul.f32 %v678_v16, %v678_v16 }
 0x104   : > { %v681_v18 = vpop.f32.mrb[2].mxu0 }
 0x105   : > { %v1527_v19 = vpop.f32.mrb[3].mxu0  ;;  %v686_v25 = vsel %vm685_vm4, %v684_v24, 0.0 }
 0x107   : > { %704 = vrot.lane.b32.xlu0 %v1919_v0, %s1764_s27 }
 0x175   : > { %v710_v20 = vpop.permute.xlu0 %709 }
 0x176   : > { %1531 = vmatmul.mubr.msk.f32.vlgmr.msra.gmra.mrb[0].mxu1 %vm711_vm3, %v710_v20 }
 0x179   : > { %v705_v26 = vpop.permute.xlu0 %704 }
 0x17a   : > { %v707_v27 = vmul.f32 %v705_v26, %v678_v16 }
 0x249   : > { %v780_v21 = vpop.f32.mrb[0].mxu1 }
 0x24a   : > { %v784_v22 = vmul.f32 %v780_v21, %v1924_v1  ;;  %v1532_v23 = vpop.f32.mrb[1].mxu1 }
 0x24c   : > { %786 = vrot.lane.b32.xlu1 %v784_v22, %s1764_s27 }
 0x270   : > { %687 = vadd.xlane.f32.xlu1 %v686_v25 }
 0x2be   : > { %v787_v28 = vpop.permute.xlu1 %786 }
 0x2bf   : > { %v789_v29 = vadd.f32 %v787_v28, %v707_v27 }
 0x2c1   : > { %791 = vrot.lane.b32.xlu0 %v789_v29, %s1763_s23 }
 0x2fd   : > { %v688_v30 = vpop.xlane.xlu1 %687 }
 0x2fe   : > { %v690_v31 = vmul.f32 0.0625, %v688_v30 }
 0x300   : > { %v691_v32 = vadd.f32 1e-06, %v690_v31 }
 0x302   : > { %1654 = vrsqrt.f32 %v691_v32 }
 0x30c   : > { %v1655_v33 = vpop.eup %1654 }
 0x30d   : > { %v693_v35 = vmul.f32 %v1655_v33, %v678_v16 }
 0x30f   : > { %v701_v36 = vmul.f32 %v1480_v34, %v693_v35 }
 0x311   : > { %702 = vst.msk [vmem:[#allocation2] sm:$0xff] %vm685_vm4, %v701_v36 }
 0x333   : > { %v792_v37 = vpop.permute.xlu0 %791 }
 0x334   : > { %794 = vst.msk [vmem:[#allocation3] sm:$0xff] %vm711_vm3, %v792_v37 }
 0x335 PF: > { %v1656_v38 = vld [vmem:[%s1947_s29] sm:$0xff]   ;;  %v1765_v39 = vmov 0.0   ;;  %v1657_v40 = vld [vmem:[%s1947_s29 + $0x8] sm:$0xff]   ;;  %vm1766_vm5 = vmmov 0   ;;  %s1767_s18 = smov 16   ;;  %vm811_vm6 = vcmask 261120   ;;  %v1073_v11 = vstv %s1931_s24 }
 0x336   : > { %1533 = vmatprep.subr.bf16.mxu0 %v1765_v39  ;;  %1546 = vmatprep.subr.bf16.mxu1 %v1765_v39  ;;  %v1768_v41 = vmov 1.0   ;;  %v1658_v42 = vld [vmem:[%s1952_s11] sm:$0xff]   ;;  %vm942_vm7 = vcmask 130048   ;;  %s1769_s29 = smov 112   ;;  %vm863_vm8 = vcmask 64512   ;;  %vm1003_vm9 = vcmask 195584  }
 0x337   : > { %1534 = vmatpush3.bf16.msra.mxu0 %v1656_v38  ;;  %1537 = vmatprep.mubr.msk.bf16.mxu0 %vm1766_vm5, %v1765_v39  ;;  %v944_v43 = vld [vmem:[#allocation2] sm:$0xff]  ;;  %v1011_v52 = vld [vmem:[%s1969_s21 + $0x8] sm:$0xff]  ;;  %s1018_s11 = scalar_lea.vmem [#allocation4], %s1931_s24 }
 0x338   : > { %1535 = vmatprep.subr.bf16.mxu0 %v1765_v39  ;;  %856 = vrot.lane.b32.xlu1 %v1919_v0, %s1767_s18  ;;  %v945_v44 = vpack.c.bf16 %v944_v43, %v944_v43  ;;  %v1010_v51 = vld [vmem:[%s1969_s21] sm:$0xff]  ;;  %1013 = vst.msk [vmem:[#allocation4 + $0x8] sm:$0xff] %vm1003_vm9, %v1011_v52  ;;  %v1015_v20 = vld [vmem:[%s1974_s2 + $0x8] sm:$0xff]  ;;  %s1020_s21 = scalar_lea.vmem [#allocation5], %s1931_s24 }
 0x339   : > { %1548 = vmatprep.mubr.msk.bf16.mxu1 %vm1766_vm5, %v1765_v39  ;;  %1547 = vmatpush3.bf16.msra.mxu1 %v1658_v42  ;;  %1012 = vst.msk [vmem:[#allocation4] sm:$0xff] %vm1003_vm9, %v1010_v51  ;;  %v1014_v19 = vld [vmem:[%s1974_s2] sm:$0xff]  ;;  %v1770_v42 = vmov (!%p1476_p0), 0.0  }
 0x33a   : > { %1552 = vmatprep.subr.bf16.mxu1 %v1765_v39  ;;  %1016 = vst.msk [vmem:[#allocation5] sm:$0xff] %vm942_vm7, %v1014_v19  ;;  %1017 = vst.msk [vmem:[#allocation5 + $0x8] sm:$0xff] %vm942_vm7, %v1015_v20  ;;  %v1659_v28 = vld [vmem:[%s1957_s0] sm:$0xff]  }
 0x33b   : > { %1536 = vmatpush3.bf16.msra.mxu0 %v1657_v40  ;;  %v997_v48 = vld [vmem:[#allocation3] sm:$0xff]  ;;  %1190 = vst.msk [vmem:[%s1987_s26] sm:$0xff] (!%p1476_p0), %vm811_vm6, %v1770_v42 }
 0x33c   : > { %1541 = vmatprep.subr.mxu0 %v1765_v39  ;;  %1549 = vmatmul.mubr.msk.bf16.vlgmr.msra.gmra.mrb[0].mxu1 %vm942_vm7, %v945_v44 }
 0x33d   : > { %1554 = vmatprep.mubr.msk.bf16.mxu1 %vm1766_vm5, %v1765_v39 }
 0x33e   : > { %1538 = vmatmul.mubr.msk.bf16.vlgmr.msra.gmra.mrb[0].mxu0 %vm811_vm6, %v1959_v9 }
 0x33f   : > { %1543 = vmatprep.mubr.msk.f32.mxu0 %vm1766_vm5, %v1765_v39  ;;  %1542 = vmatpush3.msk.msra.mxu0 %vm1962_vm0, %v1768_v41 }
 0x340   : > { %1558 = vmatprep.subr.bf16.mxu0 %v1765_v39 }
 0x3aa   : > { %v857_v4 = vpop.permute.xlu1 %856 }
 0x40f   : > { %v991_v54 = vpop.f32.mrb[0].mxu1 }
 0x410   : > { %v1550_v55 = vpop.f32.mrb[1].mxu1 }
 0x411   : > { %v849_v45 = vpop.f32.mrb[0].mxu0  ;;  %v994_v57 = vpop.f32.mrb[2].mxu1 }
 0x412   : > { %861 = vrot.lane.b32.xlu0 %v849_v45, %s1769_s29  ;;  %v1539_v46 = vpop.f32.mrb[1].mxu0  ;;  %v1551_v58 = vpop.f32.mrb[3].mxu1  ;;  %v859_v5 = vmul.f32 %v857_v4, %v849_v45 }
 0x413   : > { %v852_v47 = vpop.f32.mrb[2].mxu0 }
 0x414   : > { %v1540_v49 = vpop.f32.mrb[3].mxu0 }
 0x416   : > { %999 = vrot.lane.b32.xlu0 %v997_v48, %s1767_s18 }
 0x484   : > { %v862_v50 = vpop.permute.xlu0 %861 }
 0x485   : > { %1544 = vmatmul.mubr.msk.f32.vlgmr.msra.gmra.mrb[4].mxu0 %vm863_vm8, %v862_v50 }
 0x486   : > { %1560 = vmatprep.mubr.msk.bf16.mxu0 %vm1766_vm5, %v1765_v39 }
 0x488   : > { %v1000_v53 = vpop.permute.xlu0 %999 }
 0x489   : > { %v1002_v56 = vsel %vm942_vm7, %v991_v54, %v1000_v53 }
 0x48a   : > { %1004 = vst.msk [vmem:[%s1979_s15] sm:$0xff] %vm1003_vm9, %v1002_v56  ;;  %1019 = vst.msk [vmem:[%s1018_s11] sm:$0xff] %vm1003_vm9, %v1002_v56 }
 0x491   : > { %v1023_v59 = vld [vmem:[#allocation4] sm:$0xff]  ;;  %v1024_v60 = vld [vmem:[#allocation4 + $0x8] sm:$0xff] }
 0x492   : > { %v1025_v61 = vpack.c.bf16 %v1024_v60, %v1023_v59 }
 0x494   : > { %v1030_v62 = vsel %vm1003_vm9, %v1025_v61, 0 }
 0x495   : > { %1553 = vmatpush3.bf16.xpose.msra.mxu1 %v1030_v62 }
 0x496   : > { %1564 = vmatprep.subr.bf16.mxu1 %v1765_v39 }
 0x558   : > { %v932_v63 = vpop.f32.mrb[4].mxu0 }
 0x559   : > { %v936_v0 = vmul.f32 %v932_v63, %v1924_v1  ;;  %v1545_v2 = vpop.f32.mrb[5].mxu0  ;;  %v1074_v1 = vadd.s32 %v1073_v11, %v1933_v3 }
 0x55b   : > { %938 = vrot.lane.b32.xlu1 %v936_v0, %s1767_s18  ;;  %vm1075_vm10 = vcmp.le.s32.totalorder %v1942_v6, %v1074_v1 }
 0x5cd   : > { %v939_v7 = vpop.permute.xlu1 %938 }
 0x5ce   : > { %v941_v8 = vadd.f32 %v939_v7, %v859_v5 }
 0x5d0   : > { %v943_v9 = vsel %vm942_vm7, %v849_v45, %v941_v8 }
 0x5d1   : > { %v1022_v10 = vpack.c.bf16 %v943_v9, %v943_v9 }
 0x5d3   : > { %1555 = vmatmul.mubr.msk.bf16.vlgmr.msra.gmra.mrb[4].mxu1 %vm1003_vm9, %v1022_v10 }
 0x5d4   : > { %1566 = vmatprep.mubr.msk.bf16.mxu1 %vm1766_vm5, %v1765_v39  ;;  %1565 = vmatpush3.bf16.msra.mxu1 %v1659_v28 }
 0x6a6   : > { %v1066_v12 = vpop.f32.mrb[4].mxu1 }
 0x6a7   : > { %v1072_v13 = vmul.f32 0.20412415, %v1066_v12  ;;  %v1556_v14 = vpop.f32.mrb[5].mxu1 }
 0x6a8   : > { %v1069_v15 = vpop.f32.mrb[6].mxu1 }
 0x6a9   : > { %v1557_v16 = vpop.f32.mrb[7].mxu1  ;;  %v1076_v17 = vsel %vm1075_vm10, %v1072_v13, -1e+30 }
 0x6aa   : > { %v1077_v18 = vsel %vm942_vm7, %v1076_v17, -inf }
 0x6ab   : > { %1078 = vmax.xlane.f32.xlu0 %v1077_v18 }
 0x6c1   : > { %1006 = vrot.lane.b32.xlu0 %v991_v54, %s1769_s29 }
 0x738   : > { %v1079_v3 = vpop.xlane.xlu0 %1078 }
 0x739   : > { %v1080_v6 = vsub.f32 %v1076_v17, %v1079_v3 }
 0x73b   : > { %v1081_v21 = vmul.f32 1.442695, %v1080_v6 }
 0x73c   : > { %v1007_v22 = vpop.permute.xlu0 %1006 }
 0x73d   : > { %1660 = vpow2.f32 %v1081_v21  ;;  %1009 = vst.msk [vmem:[%s1984_s8] sm:$0xff] %vm942_vm7, %v1007_v22  ;;  %1021 = vst.msk [vmem:[%s1020_s21] sm:$0xff] %vm942_vm7, %v1007_v22 }
 0x744   : > { %v1089_v23 = vld [vmem:[#allocation5] sm:$0xff]  ;;  %v1090_v24 = vld [vmem:[#allocation5 + $0x8] sm:$0xff] }
 0x745   : > { %v1091_v25 = vpack.c.bf16 %v1090_v24, %v1089_v23 }
 0x747   : > { %v1661_v26 = vpop.eup %1660  ;;  %1559 = vmatpush3.bf16.msra.mxu0 %v1091_v25 }
 0x748   : > { %v1083_v27 = vsel %vm942_vm7, %v1661_v26, 0.0 }
 0x749   : > { %1084 = vadd.xlane.f32.xlu1 %v1083_v27 }
 0x7d6   : > { %v1085_v29 = vpop.xlane.xlu1 %1084 }
 0x7d7   : > { %1662 = vrcp.f32 %v1085_v29 }
 0x7e1   : > { %v1663_v30 = vpop.eup %1662 }
 0x7e2   : > { %v1087_v31 = vmul.f32 %v1663_v30, %v1661_v26 }
 0x7e4   : > { %v1088_v32 = vpack.c.bf16 %v1087_v31, %v1087_v31 }
 0x7e6   : > { %1561 = vmatmul.mubr.msk.bf16.vlgmr.msra.gmra.mrb[8].mxu0 %vm942_vm7, %v1088_v32 }
 0x8b9   : > { %v1129_v33 = vpop.f32.mrb[8].mxu0 }
 0x8ba   : > { %v1135_v34 = vpack.c.bf16 %v1129_v33, %v1129_v33  ;;  %v1562_v35 = vpop.f32.mrb[9].mxu0 }
 0x8bb   : > { %v1132_v36 = vpop.f32.mrb[10].mxu0 }
 0x8bc   : > { %v1563_v37 = vpop.f32.mrb[11].mxu0  ;;  %1567 = vmatmul.mubr.msk.bf16.vlgmr.msra.gmra.mrb[8].mxu1 %vm942_vm7, %v1135_v34 }
 0x98c   : > { %1189 = sbr.rel (%p1476_p0) target bundleno = 2451 (0x993), region = 68 }
 0x98f   : > { %v1181_v38 = vpop.f32.mrb[8].mxu1 }
 0x990   : > { %v1568_v39 = vpop.f32.mrb[9].mxu1 }
 0x991   : > { %v1184_v40 = vpop.f32.mrb[10].mxu1 }
 0x992   : > { %v1569_v41 = vpop.f32.mrb[11].mxu1 }
 0x993 PF: > { %v1191_v43 = vld [vmem:[%s1987_s26] sm:$0xff]  ;;  %s1496_s24 = sshll.u32 %s1746_s14, 7  ;;  %s2189_s20 = sld [smem:[#allocation25_spill]] }
 0x994   : > { %v1192_v44 = vadd.f32 %v1191_v43, %v1181_v38  ;;  %s1224_s30 = sshll.u32 %s1987_s26, 4  ;;  %s2190_s8 = sand.u32 1, %s1734_s28   ;;  %s2084_s30 = int_to_ptr.vmem [resolvable:$true] %s1224_s30 }
 0x995   : > { %s1195_s1 = scalar_lea.sflag [#allocation9], %s2190_s8  ;;  %s1664_s7 = scalar_lea.vmem %s2084_s30, 128 }
 0x996   : > { %1193 = vst.msk [vmem:[%s1987_s26] sm:$0xff] %vm811_vm6, %v1192_v44  ;;  %p1665_p1 = scmp.ne.s32.totalorder %s2084_s30, %s1664_s7  ;;  %s1771_s14 = smov [#allocation8]  }
 0x997   : > { %s1668_s17 = sshll.u32 %s1771_s14, 4  ;;  %s1669_s17 = int_to_ptr.vmem [resolvable:$false] %s1668_s17 }
 0x998   : > { %p1666_p2 = pnand %p1665_p1, %p1894_p3  ;;  %s1670_s22 = scalar_lea.vmem %s1669_s17, 256 }
 0x999   : > { %s2081_s25 = scalar_lea.hbm %s2189_s20, %s1496_s24  ;;  %p1671_p5 = scmp.lt.s32.totalorder %s2084_s30, %s1669_s17 }
 0x99a   : > { %p1667_p4 = pneg %p1666_p2  ;;  %p1672_p6 = scmp.lt.s32.totalorder %s1670_s22, %s1664_s7 }
 0x99c   : > { %p1673_p7 = por %p1672_p6, %p1671_p5 }
 0x99e   : > { %p1674_p8 = pnand %p1673_p7, %p1667_p4 }
 0x9a0   : > { %1677 = shalt.err (!%p1674_p8)
}
 0x9a1   : > { %s1678_s26 = scalar_lea.hbm %s2081_s25, 128  ;;  %s1682_s19 = scalar_lea.hbm %s2189_s20, 256 }
 0x9a2   : > { %p1679_p10 = scmp.ne.s32.totalorder %s2081_s25, %s1678_s26  ;;  %p1683_p13 = scmp.lt.u32.totalorder %s2081_s25, %s2189_s20 }
 0x9a3   : > { %p1684_p0 = scmp.lt.u32.totalorder %s1682_s19, %s1678_s26  ;;  %p1686_p2 = scmp.lt.u32.totalorder %s1678_s26, %s2081_s25 }
 0x9a4   : > { %p1680_p11 = pnand %p1679_p10, %p1894_p3 }
 0x9a5   : > { %p1685_p1 = por %p1684_p0, %p1683_p13 }
 0x9a6   : > { %p1681_p12 = pneg %p1680_p11 }
 0x9a7   : > { %p1687_p4 = por %p1686_p2, %p1685_p1 }
 0x9a9   : > { %p1688_p5 = pnand %p1687_p4, %p1681_p12 }
 0x9ab   : > { %1691 = shalt.err (!%p1688_p5)
}
 0x9ac   : > { %1570 = dma.vmem_to_hbm [thread:$0]  (%p1894_p3), %s2084_s30, 128, %s2081_s25, %s1195_s1  }
 0x9ad PF: > { %s2191_s29 = sld [smem:[#allocation15_spill]]  ;;  %s2192_s11 = sld [smem:[#allocation11_spill]] }
 0x9b3   : > { %p1576_p6 = scmp.ge.s32.totalorder %s2191_s29, 2  ;;  %s1242_s24 = sand.u32 1, %s2192_s11  }
 0x9b4   : > { %s1243_s0 = scalar_lea.sflag [#allocation9], %s1242_s24 }
 0x9b5   : > { %p1573_p7 = pnand %p1576_p6, %p1904_p9 }
 0x9b7   : > { %1725 = dma.done.wait (!%p1573_p7), %s1243_s0, 128  }
 0x9b8   : > { %1727 = vsyncadd (!%p1573_p7), %s1243_s0, 4294967168  ;;  %s28_s17 = sadd.s32 1, %s2191_s29   ;;  %s2194_s15 = sld [smem:[#allocation12_spill]] }
 0x9b9   : > { %p25_p8 = scmp.ge.s32.totalorder %s28_s17, 6   ;;  %s2195_s29 = sld [smem:[#allocation20_spill]] }
 0x9ba   : > { %s2196_s30 = sld [smem:[#allocation13_spill]]  ;;  %s2197_s14 = sld [smem:[#allocation14_spill]] }
 0x9bb   : > { %s2198_s2 = sld [smem:[#allocation16_spill]]  ;;  %s2199_s16 = sld [smem:[#allocation18_spill]] }
 0x9bc   : > { %s2200_s27 = smov %s1734_s28  ;;  %27 = sbr.rel (!%p25_p8) target bundleno = 12 (0xc), region = 144 }
 0x9be   : > { %s2201_s28 = smov %s2194_s15 }
 0x9c1   : > { %s2202_s15 = smov %s2198_s2 }
 0x9c3   :  { %1270 = vsyncpa [#allocation9], 1 }
 0x9c4   :  { %1272 = vsyncpa [#allocation9 + $0x1], 1 }

</bundles_post_ra>
